<compile_context>
chip_gen: v5e
topology: v5e:2x2
jax: 0.10.0
libtpu: 0.0.40
codegen_flags: <defaults>
</compile_context>

<pallas_src>
import functools

import jax
import jax.numpy as jnp
from jax.experimental import pallas as pl
from jax.experimental.pallas import tpu as pltpu

EPS = 1e-5


def _cross_adain_kernel(text_ref, audio_ref, video_ref,
                        ta_ref, aa_ref, va_ref,
                        text_out_ref, audio_out_ref, video_out_ref):
    L = text_ref.shape[1]
    inv_lm1 = 1.0 / (L - 1)          # unbiased variance (torch.var default)

    t = text_ref[...].astype(jnp.float32)
    a = audio_ref[...].astype(jnp.float32)
    v = video_ref[...].astype(jnp.float32)

    def stats(x):                     # reduce over L (axis=1) -> per-(n, c)
        mean = jnp.mean(x, axis=1, keepdims=True)                # (BN,1,BC)
        var = jnp.sum((x - mean) ** 2, axis=1, keepdims=True) * inv_lm1
        return mean, var

    t_mean, t_var = stats(t)
    a_mean, a_var = stats(a)
    v_mean, v_var = stats(v)

    ta = ta_ref[...].astype(jnp.float32)     # (BN,1,1)
    aa = aa_ref[...].astype(jnp.float32)
    va = va_ref[...].astype(jnp.float32)

    t_mean_new = (1.0 - ta) * t_mean + ta * 0.5 * a_mean + ta * 0.5 * v_mean
    t_var_new = (1.0 - ta) * t_var + ta * 0.5 * a_var + ta * 0.5 * v_var
    a_mean_new = (1.0 - aa) * a_mean + aa * 0.5 * t_mean + aa * 0.5 * v_mean
    a_var_new = (1.0 - aa) * a_var + aa * 0.5 * t_var + aa * 0.5 * v_var
    v_mean_new = (1.0 - va) * v_mean + va * 0.5 * t_mean + va * 0.5 * a_mean
    # NOTE: reproduces the reference module exactly (it mixes video_var with
    # itself here instead of text_var).
    v_var_new = (1.0 - va) * v_var + va * 0.5 * v_var + va * 0.5 * a_var

    def styled(x, mean, var, mean_new, var_new, out_ref):
        # Fused AdaIN:
        #   (x - mean)/sqrt(var+eps)*sqrt(var_new+eps) + mean_new
        # = x * scale + shift, with per-channel (BN,1,BC) scale/shift, so the
        # per-element work is a single mul+add and no norm temporary exists.
        scale = jnp.sqrt((var_new + EPS) / (var + EPS))
        shift = mean_new - mean * scale
        out_ref[...] = (x * scale + shift).astype(out_ref.dtype)

    styled(t, t_mean, t_var, t_mean_new, t_var_new, text_out_ref)
    styled(a, a_mean, a_var, a_mean_new, a_var_new, audio_out_ref)
    styled(v, v_mean, v_var, v_mean_new, v_var_new, video_out_ref)


def _largest_divisor_at_most(n, cap):
    d = max(1, min(n, cap))
    while n % d != 0:
        d -= 1
    return d


def _pick_block_c(C):
    """Lane-dense C tile; adds a parallel C axis for large C (feeds both v7x
    TensorCores and bounds per-step VMEM)."""
    if C % 128 != 0:
        return C                      # must take the full dim (block rule)
    for bc in (512, 384, 256, 128):
        if bc <= C and C % bc == 0:
            return bc
    return C


@functools.partial(jax.jit, static_argnames=("training",))
def cross_style_randomization(text, audio, video, text_alpha, audio_alpha,
                              video_alpha, training=True):
    """text/audio/video: (N, L, C).  *_alpha: (N,), (N,1) or (N,1,1)."""
    if not training:
        # eval mode: permute + permute back == identity
        return text, audio, video

    N, L, C = text.shape
    assert audio.shape == (N, L, C) and video.shape == (N, L, C), (
        "cross-modal stat mixing requires equal channel sizes")
    assert L >= 2, "unbiased variance requires L >= 2"

    text_alpha = jnp.reshape(text_alpha, (N, 1, 1)).astype(jnp.float32)
    audio_alpha = jnp.reshape(audio_alpha, (N, 1, 1)).astype(jnp.float32)
    video_alpha = jnp.reshape(video_alpha, (N, 1, 1)).astype(jnp.float32)

    BC = _pick_block_c(C)
    # Budget: keep each (BN, L, BC) fp32 block <= ~1 MiB, so 6 double-buffered
    # data arrays + fp32 temporaries stay well under the v7x 64 MiB VMEM
    # (and the 32 MiB scoped default); v5e/v6e have more headroom.
    budget_elems = 256 * 1024
    BN = _largest_divisor_at_most(N, max(1, budget_elems // (L * BC)))

    data_blk = pl.BlockSpec((BN, L, BC), lambda n, c: (n, 0, c))
    alpha_blk = pl.BlockSpec((BN, 1, 1), lambda n, c: (n, 0, 0))

    grid = (N // BN, C // BC)

    itemsize = jnp.dtype(text.dtype).itemsize
    cost = pl.CostEstimate(
        flops=30 * N * L * C,
        transcendentals=6 * N * C,
        bytes_accessed=6 * N * L * C * itemsize + 3 * N * 4,
    )

    out_shape = (
        jax.ShapeDtypeStruct((N, L, C), text.dtype),
        jax.ShapeDtypeStruct((N, L, C), audio.dtype),
        jax.ShapeDtypeStruct((N, L, C), video.dtype),
    )

    return pl.pallas_call(
        _cross_adain_kernel,
        grid_spec=pltpu.PrefetchScalarGridSpec(
            num_scalar_prefetch=0,
            grid=grid,
            in_specs=[data_blk, data_blk, data_blk,
                      alpha_blk, alpha_blk, alpha_blk],
            out_specs=[data_blk, data_blk, data_blk],
        ),
        out_shape=out_shape,
        compiler_params=pltpu.CompilerParams(
            dimension_semantics=("parallel", "parallel"),
            vmem_limit_bytes=48 * 1024 * 1024),
        cost_estimate=cost,
    )(text, audio, video, text_alpha, audio_alpha, video_alpha)


def _reference(text, audio, video, t_alpha, a_alpha, v_alpha, eps=EPS):
    """Pure-JAX mirror of the PyTorch training-mode forward (N,C,L layout)."""
    t = jnp.transpose(text, (0, 2, 1))
    a = jnp.transpose(audio, (0, 2, 1))
    v = jnp.transpose(video, (0, 2, 1))

    def stats(x):
        m = jnp.mean(x, axis=-1, keepdims=True)
        var = jnp.sum((x - m) ** 2, axis=-1, keepdims=True) / (x.shape[-1] - 1)
        return m, var, (x - m) / jnp.sqrt(var + eps)

    tm, tv, tn_ = stats(t)
    am, av, an_ = stats(a)
    vm, vv, vn_ = stats(v)
    ta = jnp.reshape(t_alpha, (-1, 1, 1))
    aa = jnp.reshape(a_alpha, (-1, 1, 1))
    va = jnp.reshape(v_alpha, (-1, 1, 1))
    tmn = (1 - ta) * tm + ta / 2 * am + ta / 2 * vm
    tvn = (1 - ta) * tv + ta / 2 * av + ta / 2 * vv
    amn = (1 - aa) * am + aa / 2 * tm + aa / 2 * vm
    avn = (1 - aa) * av + aa / 2 * tv + aa / 2 * vv
    vmn = (1 - va) * vm + va / 2 * tm + va / 2 * am
    vvn = (1 - va) * vv + va / 2 * vv + va / 2 * av
    to = tn_ * jnp.sqrt(tvn + eps) + tmn
    ao = an_ * jnp.sqrt(avn + eps) + amn
    vo = vn_ * jnp.sqrt(vvn + eps) + vmn
    return (jnp.transpose(to, (0, 2, 1)),
            jnp.transpose(ao, (0, 2, 1)),
            jnp.transpose(vo, (0, 2, 1)))


if __name__ == "__main__":
    N, L, C = 2, 8, 128   # small, lane-dense (C multiple of 128)
    K = 1

    key = jax.random.PRNGKey(0)
    k_t, k_a, k_v, k_ta, k_aa, k_va = jax.random.split(key, 6)

    text = jax.random.normal(k_t, (N, L, C), dtype=jnp.float32)
    audio = jax.random.normal(k_a, (N, L, C), dtype=jnp.float32)
    video = jax.random.normal(k_v, (N, L, C), dtype=jnp.float32)

    # The module's randomness lives outside the kernel (the mixing weights are
    # kernel inputs).  For a deterministic, NaN-free check we draw all three
    # alphas uniformly in [0, 1): the original module draws audio/video alphas
    # from a normal distribution, which can make mixed variances negative and
    # turn sqrt(var_new + eps) into NaN — a quirk of the original code.
    # TODO(synk): idx_swap = torch.randperm(N) is computed but never used in
    # the reference forward, so it is intentionally omitted.
    text_alpha = jax.random.uniform(k_ta, (N, 1, 1), dtype=jnp.float32) / K
    audio_alpha = jax.random.uniform(k_aa, (N, 1, 1), dtype=jnp.float32) / K
    video_alpha = jax.random.uniform(k_va, (N, 1, 1), dtype=jnp.float32) / K

    out_t, out_a, out_v = cross_style_randomization(
        text, audio, video, text_alpha, audio_alpha, video_alpha, training=True)
    jax.block_until_ready((out_t, out_a, out_v))

    ref_t, ref_a, ref_v = _reference(text, audio, video,
                                     text_alpha, audio_alpha, video_alpha)

    for name, got, want in (("text", out_t, ref_t),
                            ("audio", out_a, ref_a),
                            ("video", out_v, ref_v)):
        assert jnp.allclose(got, want, atol=1e-5, rtol=1e-4), (
            name, float(jnp.max(jnp.abs(got - want))))

    print("KERNEL_OK")
</pallas_src>

<mosaic_0001>
module attributes {stable_mosaic.version = 11 : i64} {
  func.func @_cross_adain_kernel(%arg0: i32, %arg1: i32, %arg2: memref<2x8x128xf32, #tpu.memory_space<vmem>>, %arg3: memref<2x8x128xf32, #tpu.memory_space<vmem>>, %arg4: memref<2x8x128xf32, #tpu.memory_space<vmem>>, %arg5: memref<2x1x1xf32, #tpu.memory_space<vmem>>, %arg6: memref<2x1x1xf32, #tpu.memory_space<vmem>>, %arg7: memref<2x1x1xf32, #tpu.memory_space<vmem>>, %arg8: memref<2x8x128xf32, #tpu.memory_space<vmem>>, %arg9: memref<2x8x128xf32, #tpu.memory_space<vmem>>, %arg10: memref<2x8x128xf32, #tpu.memory_space<vmem>>) attributes {dimension_semantics = [#tpu.dimension_semantics<parallel>, #tpu.dimension_semantics<parallel>], iteration_bounds = array<i64: 1, 1>, scalar_prefetch = 0 : i64, scratch_operands = 0 : i64, tpu.core_type = #tpu.core_type<tc>, window_params = [{transform_indices = @transform_0, window_bounds = array<i64: 2, 8, 128>}, {transform_indices = @transform_1, window_bounds = array<i64: 2, 8, 128>}, {transform_indices = @transform_2, window_bounds = array<i64: 2, 8, 128>}, {transform_indices = @transform_3, window_bounds = array<i64: 2, 1, 1>}, {transform_indices = @transform_4, window_bounds = array<i64: 2, 1, 1>}, {transform_indices = @transform_5, window_bounds = array<i64: 2, 1, 1>}, {transform_indices = @transform_6, window_bounds = array<i64: 2, 8, 128>}, {transform_indices = @transform_7, window_bounds = array<i64: 2, 8, 128>}, {transform_indices = @transform_8, window_bounds = array<i64: 2, 8, 128>}]} {
    %c0 = arith.constant 0 : index
    %c0_0 = arith.constant 0 : index
    %c0_1 = arith.constant 0 : index
    %0 = vector.load %arg2[%c0, %c0_0, %c0_1] : memref<2x8x128xf32, #tpu.memory_space<vmem>>, vector<2x8x128xf32>
    %c0_2 = arith.constant 0 : index
    %c0_3 = arith.constant 0 : index
    %c0_4 = arith.constant 0 : index
    %1 = vector.load %arg3[%c0_2, %c0_3, %c0_4] : memref<2x8x128xf32, #tpu.memory_space<vmem>>, vector<2x8x128xf32>
    %c0_5 = arith.constant 0 : index
    %c0_6 = arith.constant 0 : index
    %c0_7 = arith.constant 0 : index
    %2 = vector.load %arg4[%c0_5, %c0_6, %c0_7] : memref<2x8x128xf32, #tpu.memory_space<vmem>>, vector<2x8x128xf32>
    %cst = arith.constant dense<0.000000e+00> : vector<2x128xf32>
    %3 = vector.multi_reduction <add>, %0, %cst [1] : vector<2x8x128xf32> to vector<2x128xf32>
    %4 = vector.shape_cast %3 : vector<2x128xf32> to vector<2x1x128xf32>
    %cst_8 = arith.constant 8.000000e+00 : f32
    %5 = vector.broadcast %cst_8 : f32 to vector<2x1x128xf32>
    %6 = arith.divf %4, %5 : vector<2x1x128xf32>
    %7 = vector.broadcast %6 : vector<2x1x128xf32> to vector<2x8x128xf32>
    %8 = arith.subf %0, %7 : vector<2x8x128xf32>
    %9 = arith.mulf %8, %8 : vector<2x8x128xf32>
    %cst_9 = arith.constant dense<0.000000e+00> : vector<2x128xf32>
    %10 = vector.multi_reduction <add>, %9, %cst_9 [1] : vector<2x8x128xf32> to vector<2x128xf32>
    %11 = vector.shape_cast %10 : vector<2x128xf32> to vector<2x1x128xf32>
    %cst_10 = arith.constant 0.142857149 : f32
    %12 = vector.broadcast %cst_10 : f32 to vector<2x1x128xf32>
    %13 = arith.mulf %11, %12 : vector<2x1x128xf32>
    %cst_11 = arith.constant dense<0.000000e+00> : vector<2x128xf32>
    %14 = vector.multi_reduction <add>, %1, %cst_11 [1] : vector<2x8x128xf32> to vector<2x128xf32>
    %15 = vector.shape_cast %14 : vector<2x128xf32> to vector<2x1x128xf32>
    %cst_12 = arith.constant 8.000000e+00 : f32
    %16 = vector.broadcast %cst_12 : f32 to vector<2x1x128xf32>
    %17 = arith.divf %15, %16 : vector<2x1x128xf32>
    %18 = vector.broadcast %17 : vector<2x1x128xf32> to vector<2x8x128xf32>
    %19 = arith.subf %1, %18 : vector<2x8x128xf32>
    %20 = arith.mulf %19, %19 : vector<2x8x128xf32>
    %cst_13 = arith.constant dense<0.000000e+00> : vector<2x128xf32>
    %21 = vector.multi_reduction <add>, %20, %cst_13 [1] : vector<2x8x128xf32> to vector<2x128xf32>
    %22 = vector.shape_cast %21 : vector<2x128xf32> to vector<2x1x128xf32>
    %cst_14 = arith.constant 0.142857149 : f32
    %23 = vector.broadcast %cst_14 : f32 to vector<2x1x128xf32>
    %24 = arith.mulf %22, %23 : vector<2x1x128xf32>
    %cst_15 = arith.constant dense<0.000000e+00> : vector<2x128xf32>
    %25 = vector.multi_reduction <add>, %2, %cst_15 [1] : vector<2x8x128xf32> to vector<2x128xf32>
    %26 = vector.shape_cast %25 : vector<2x128xf32> to vector<2x1x128xf32>
    %cst_16 = arith.constant 8.000000e+00 : f32
    %27 = vector.broadcast %cst_16 : f32 to vector<2x1x128xf32>
    %28 = arith.divf %26, %27 : vector<2x1x128xf32>
    %29 = vector.broadcast %28 : vector<2x1x128xf32> to vector<2x8x128xf32>
    %30 = arith.subf %2, %29 : vector<2x8x128xf32>
    %31 = arith.mulf %30, %30 : vector<2x8x128xf32>
    %cst_17 = arith.constant dense<0.000000e+00> : vector<2x128xf32>
    %32 = vector.multi_reduction <add>, %31, %cst_17 [1] : vector<2x8x128xf32> to vector<2x128xf32>
    %33 = vector.shape_cast %32 : vector<2x128xf32> to vector<2x1x128xf32>
    %cst_18 = arith.constant 0.142857149 : f32
    %34 = vector.broadcast %cst_18 : f32 to vector<2x1x128xf32>
    %35 = arith.mulf %33, %34 : vector<2x1x128xf32>
    %c0_19 = arith.constant 0 : index
    %c0_20 = arith.constant 0 : index
    %c0_21 = arith.constant 0 : index
    %36 = vector.load %arg5[%c0_19, %c0_20, %c0_21] : memref<2x1x1xf32, #tpu.memory_space<vmem>>, vector<2x1x1xf32>
    %c0_22 = arith.constant 0 : index
    %c0_23 = arith.constant 0 : index
    %c0_24 = arith.constant 0 : index
    %37 = vector.load %arg6[%c0_22, %c0_23, %c0_24] : memref<2x1x1xf32, #tpu.memory_space<vmem>>, vector<2x1x1xf32>
    %c0_25 = arith.constant 0 : index
    %c0_26 = arith.constant 0 : index
    %c0_27 = arith.constant 0 : index
    %38 = vector.load %arg7[%c0_25, %c0_26, %c0_27] : memref<2x1x1xf32, #tpu.memory_space<vmem>>, vector<2x1x1xf32>
    %cst_28 = arith.constant 1.000000e+00 : f32
    %39 = vector.broadcast %cst_28 : f32 to vector<2x1x1xf32>
    %40 = arith.subf %39, %36 : vector<2x1x1xf32>
    %41 = vector.broadcast %40 : vector<2x1x1xf32> to vector<2x1x128xf32>
    %42 = arith.mulf %41, %6 : vector<2x1x128xf32>
    %cst_29 = arith.constant 5.000000e-01 : f32
    %43 = vector.broadcast %cst_29 : f32 to vector<2x1x1xf32>
    %44 = arith.mulf %36, %43 : vector<2x1x1xf32>
    %45 = vector.broadcast %44 : vector<2x1x1xf32> to vector<2x1x128xf32>
    %46 = arith.mulf %45, %17 : vector<2x1x128xf32>
    %47 = arith.addf %42, %46 : vector<2x1x128xf32>
    %cst_30 = arith.constant 5.000000e-01 : f32
    %48 = vector.broadcast %cst_30 : f32 to vector<2x1x1xf32>
    %49 = arith.mulf %36, %48 : vector<2x1x1xf32>
    %50 = vector.broadcast %49 : vector<2x1x1xf32> to vector<2x1x128xf32>
    %51 = arith.mulf %50, %28 : vector<2x1x128xf32>
    %52 = arith.addf %47, %51 : vector<2x1x128xf32>
    %cst_31 = arith.constant 1.000000e+00 : f32
    %53 = vector.broadcast %cst_31 : f32 to vector<2x1x1xf32>
    %54 = arith.subf %53, %36 : vector<2x1x1xf32>
    %55 = vector.broadcast %54 : vector<2x1x1xf32> to vector<2x1x128xf32>
    %56 = arith.mulf %55, %13 : vector<2x1x128xf32>
    %cst_32 = arith.constant 5.000000e-01 : f32
    %57 = vector.broadcast %cst_32 : f32 to vector<2x1x1xf32>
    %58 = arith.mulf %36, %57 : vector<2x1x1xf32>
    %59 = vector.broadcast %58 : vector<2x1x1xf32> to vector<2x1x128xf32>
    %60 = arith.mulf %59, %24 : vector<2x1x128xf32>
    %61 = arith.addf %56, %60 : vector<2x1x128xf32>
    %cst_33 = arith.constant 5.000000e-01 : f32
    %62 = vector.broadcast %cst_33 : f32 to vector<2x1x1xf32>
    %63 = arith.mulf %36, %62 : vector<2x1x1xf32>
    %64 = vector.broadcast %63 : vector<2x1x1xf32> to vector<2x1x128xf32>
    %65 = arith.mulf %64, %35 : vector<2x1x128xf32>
    %66 = arith.addf %61, %65 : vector<2x1x128xf32>
    %cst_34 = arith.constant 1.000000e+00 : f32
    %67 = vector.broadcast %cst_34 : f32 to vector<2x1x1xf32>
    %68 = arith.subf %67, %37 : vector<2x1x1xf32>
    %69 = vector.broadcast %68 : vector<2x1x1xf32> to vector<2x1x128xf32>
    %70 = arith.mulf %69, %17 : vector<2x1x128xf32>
    %cst_35 = arith.constant 5.000000e-01 : f32
    %71 = vector.broadcast %cst_35 : f32 to vector<2x1x1xf32>
    %72 = arith.mulf %37, %71 : vector<2x1x1xf32>
    %73 = vector.broadcast %72 : vector<2x1x1xf32> to vector<2x1x128xf32>
    %74 = arith.mulf %73, %6 : vector<2x1x128xf32>
    %75 = arith.addf %70, %74 : vector<2x1x128xf32>
    %cst_36 = arith.constant 5.000000e-01 : f32
    %76 = vector.broadcast %cst_36 : f32 to vector<2x1x1xf32>
    %77 = arith.mulf %37, %76 : vector<2x1x1xf32>
    %78 = vector.broadcast %77 : vector<2x1x1xf32> to vector<2x1x128xf32>
    %79 = arith.mulf %78, %28 : vector<2x1x128xf32>
    %80 = arith.addf %75, %79 : vector<2x1x128xf32>
    %cst_37 = arith.constant 1.000000e+00 : f32
    %81 = vector.broadcast %cst_37 : f32 to vector<2x1x1xf32>
    %82 = arith.subf %81, %37 : vector<2x1x1xf32>
    %83 = vector.broadcast %82 : vector<2x1x1xf32> to vector<2x1x128xf32>
    %84 = arith.mulf %83, %24 : vector<2x1x128xf32>
    %cst_38 = arith.constant 5.000000e-01 : f32
    %85 = vector.broadcast %cst_38 : f32 to vector<2x1x1xf32>
    %86 = arith.mulf %37, %85 : vector<2x1x1xf32>
    %87 = vector.broadcast %86 : vector<2x1x1xf32> to vector<2x1x128xf32>
    %88 = arith.mulf %87, %13 : vector<2x1x128xf32>
    %89 = arith.addf %84, %88 : vector<2x1x128xf32>
    %cst_39 = arith.constant 5.000000e-01 : f32
    %90 = vector.broadcast %cst_39 : f32 to vector<2x1x1xf32>
    %91 = arith.mulf %37, %90 : vector<2x1x1xf32>
    %92 = vector.broadcast %91 : vector<2x1x1xf32> to vector<2x1x128xf32>
    %93 = arith.mulf %92, %35 : vector<2x1x128xf32>
    %94 = arith.addf %89, %93 : vector<2x1x128xf32>
    %cst_40 = arith.constant 1.000000e+00 : f32
    %95 = vector.broadcast %cst_40 : f32 to vector<2x1x1xf32>
    %96 = arith.subf %95, %38 : vector<2x1x1xf32>
    %97 = vector.broadcast %96 : vector<2x1x1xf32> to vector<2x1x128xf32>
    %98 = arith.mulf %97, %28 : vector<2x1x128xf32>
    %cst_41 = arith.constant 5.000000e-01 : f32
    %99 = vector.broadcast %cst_41 : f32 to vector<2x1x1xf32>
    %100 = arith.mulf %38, %99 : vector<2x1x1xf32>
    %101 = vector.broadcast %100 : vector<2x1x1xf32> to vector<2x1x128xf32>
    %102 = arith.mulf %101, %6 : vector<2x1x128xf32>
    %103 = arith.addf %98, %102 : vector<2x1x128xf32>
    %cst_42 = arith.constant 5.000000e-01 : f32
    %104 = vector.broadcast %cst_42 : f32 to vector<2x1x1xf32>
    %105 = arith.mulf %38, %104 : vector<2x1x1xf32>
    %106 = vector.broadcast %105 : vector<2x1x1xf32> to vector<2x1x128xf32>
    %107 = arith.mulf %106, %17 : vector<2x1x128xf32>
    %108 = arith.addf %103, %107 : vector<2x1x128xf32>
    %cst_43 = arith.constant 1.000000e+00 : f32
    %109 = vector.broadcast %cst_43 : f32 to vector<2x1x1xf32>
    %110 = arith.subf %109, %38 : vector<2x1x1xf32>
    %111 = vector.broadcast %110 : vector<2x1x1xf32> to vector<2x1x128xf32>
    %112 = arith.mulf %111, %35 : vector<2x1x128xf32>
    %cst_44 = arith.constant 5.000000e-01 : f32
    %113 = vector.broadcast %cst_44 : f32 to vector<2x1x1xf32>
    %114 = arith.mulf %38, %113 : vector<2x1x1xf32>
    %115 = vector.broadcast %114 : vector<2x1x1xf32> to vector<2x1x128xf32>
    %116 = arith.mulf %115, %35 : vector<2x1x128xf32>
    %117 = arith.addf %112, %116 : vector<2x1x128xf32>
    %cst_45 = arith.constant 5.000000e-01 : f32
    %118 = vector.broadcast %cst_45 : f32 to vector<2x1x1xf32>
    %119 = arith.mulf %38, %118 : vector<2x1x1xf32>
    %120 = vector.broadcast %119 : vector<2x1x1xf32> to vector<2x1x128xf32>
    %121 = arith.mulf %120, %24 : vector<2x1x128xf32>
    %122 = arith.addf %117, %121 : vector<2x1x128xf32>
    %cst_46 = arith.constant 9.99999974E-6 : f32
    %123 = vector.broadcast %cst_46 : f32 to vector<2x1x128xf32>
    %124 = arith.addf %66, %123 : vector<2x1x128xf32>
    %cst_47 = arith.constant 9.99999974E-6 : f32
    %125 = vector.broadcast %cst_47 : f32 to vector<2x1x128xf32>
    %126 = arith.addf %13, %125 : vector<2x1x128xf32>
    %127 = arith.divf %124, %126 : vector<2x1x128xf32>
    %128 = math.sqrt %127 : vector<2x1x128xf32>
    %129 = arith.mulf %6, %128 : vector<2x1x128xf32>
    %130 = arith.subf %52, %129 : vector<2x1x128xf32>
    %131 = vector.broadcast %128 : vector<2x1x128xf32> to vector<2x8x128xf32>
    %132 = arith.mulf %0, %131 : vector<2x8x128xf32>
    %133 = vector.broadcast %130 : vector<2x1x128xf32> to vector<2x8x128xf32>
    %134 = arith.addf %132, %133 : vector<2x8x128xf32>
    %c0_48 = arith.constant 0 : index
    %c0_49 = arith.constant 0 : index
    %c0_50 = arith.constant 0 : index
    %135 = vector.load %arg8[%c0_48, %c0_49, %c0_50] : memref<2x8x128xf32, #tpu.memory_space<vmem>>, vector<2x8x128xf32>
    tpu.vector_store %arg8[%c0_48, %c0_49, %c0_50], %134 {strides = array<i32>} : memref<2x8x128xf32, #tpu.memory_space<vmem>>, vector<2x8x128xf32>,
    %cst_51 = arith.constant 9.99999974E-6 : f32
    %136 = vector.broadcast %cst_51 : f32 to vector<2x1x128xf32>
    %137 = arith.addf %94, %136 : vector<2x1x128xf32>
    %cst_52 = arith.constant 9.99999974E-6 : f32
    %138 = vector.broadcast %cst_52 : f32 to vector<2x1x128xf32>
    %139 = arith.addf %24, %138 : vector<2x1x128xf32>
    %140 = arith.divf %137, %139 : vector<2x1x128xf32>
    %141 = math.sqrt %140 : vector<2x1x128xf32>
    %142 = arith.mulf %17, %141 : vector<2x1x128xf32>
    %143 = arith.subf %80, %142 : vector<2x1x128xf32>
    %144 = vector.broadcast %141 : vector<2x1x128xf32> to vector<2x8x128xf32>
    %145 = arith.mulf %1, %144 : vector<2x8x128xf32>
    %146 = vector.broadcast %143 : vector<2x1x128xf32> to vector<2x8x128xf32>
    %147 = arith.addf %145, %146 : vector<2x8x128xf32>
    %c0_53 = arith.constant 0 : index
    %c0_54 = arith.constant 0 : index
    %c0_55 = arith.constant 0 : index
    %148 = vector.load %arg9[%c0_53, %c0_54, %c0_55] : memref<2x8x128xf32, #tpu.memory_space<vmem>>, vector<2x8x128xf32>
    tpu.vector_store %arg9[%c0_53, %c0_54, %c0_55], %147 {strides = array<i32>} : memref<2x8x128xf32, #tpu.memory_space<vmem>>, vector<2x8x128xf32>,
    %cst_56 = arith.constant 9.99999974E-6 : f32
    %149 = vector.broadcast %cst_56 : f32 to vector<2x1x128xf32>
    %150 = arith.addf %122, %149 : vector<2x1x128xf32>
    %cst_57 = arith.constant 9.99999974E-6 : f32
    %151 = vector.broadcast %cst_57 : f32 to vector<2x1x128xf32>
    %152 = arith.addf %35, %151 : vector<2x1x128xf32>
    %153 = arith.divf %150, %152 : vector<2x1x128xf32>
    %154 = math.sqrt %153 : vector<2x1x128xf32>
    %155 = arith.mulf %28, %154 : vector<2x1x128xf32>
    %156 = arith.subf %108, %155 : vector<2x1x128xf32>
    %157 = vector.broadcast %154 : vector<2x1x128xf32> to vector<2x8x128xf32>
    %158 = arith.mulf %2, %157 : vector<2x8x128xf32>
    %159 = vector.broadcast %156 : vector<2x1x128xf32> to vector<2x8x128xf32>
    %160 = arith.addf %158, %159 : vector<2x8x128xf32>
    %c0_58 = arith.constant 0 : index
    %c0_59 = arith.constant 0 : index
    %c0_60 = arith.constant 0 : index
    %161 = vector.load %arg10[%c0_58, %c0_59, %c0_60] : memref<2x8x128xf32, #tpu.memory_space<vmem>>, vector<2x8x128xf32>
    tpu.vector_store %arg10[%c0_58, %c0_59, %c0_60], %160 {strides = array<i32>} : memref<2x8x128xf32, #tpu.memory_space<vmem>>, vector<2x8x128xf32>,
    return
  }
  func.func @transform_0(%arg0: i32, %arg1: i32) -> (i32, i32, i32) {
    %c0_i32 = arith.constant 0 : i32
    %c0_i32_0 = arith.constant 0 : i32
    return %arg0, %c0_i32, %arg1 : i32, i32, i32
  }
  func.func @transform_1(%arg0: i32, %arg1: i32) -> (i32, i32, i32) {
    %c0_i32 = arith.constant 0 : i32
    %c0_i32_0 = arith.constant 0 : i32
    return %arg0, %c0_i32, %arg1 : i32, i32, i32
  }
  func.func @transform_2(%arg0: i32, %arg1: i32) -> (i32, i32, i32) {
    %c0_i32 = arith.constant 0 : i32
    %c0_i32_0 = arith.constant 0 : i32
    return %arg0, %c0_i32, %arg1 : i32, i32, i32
  }
  func.func @transform_3(%arg0: i32, %arg1: i32) -> (i32, i32, i32) {
    %c0_i32 = arith.constant 0 : i32
    %c0_i32_0 = arith.constant 0 : i32
    %c0_i32_1 = arith.constant 0 : i32
    return %arg0, %c0_i32, %c0_i32_0 : i32, i32, i32
  }
  func.func @transform_4(%arg0: i32, %arg1: i32) -> (i32, i32, i32) {
    %c0_i32 = arith.constant 0 : i32
    %c0_i32_0 = arith.constant 0 : i32
    %c0_i32_1 = arith.constant 0 : i32
    return %arg0, %c0_i32, %c0_i32_0 : i32, i32, i32
  }
  func.func @transform_5(%arg0: i32, %arg1: i32) -> (i32, i32, i32) {
    %c0_i32 = arith.constant 0 : i32
    %c0_i32_0 = arith.constant 0 : i32
    %c0_i32_1 = arith.constant 0 : i32
    return %arg0, %c0_i32, %c0_i32_0 : i32, i32, i32
  }
  func.func @transform_6(%arg0: i32, %arg1: i32) -> (i32, i32, i32) {
    %c0_i32 = arith.constant 0 : i32
    %c0_i32_0 = arith.constant 0 : i32
    return %arg0, %c0_i32, %arg1 : i32, i32, i32
  }
  func.func @transform_7(%arg0: i32, %arg1: i32) -> (i32, i32, i32) {
    %c0_i32 = arith.constant 0 : i32
    %c0_i32_0 = arith.constant 0 : i32
    return %arg0, %c0_i32, %arg1 : i32, i32, i32
  }
  func.func @transform_8(%arg0: i32, %arg1: i32) -> (i32, i32, i32) {
    %c0_i32 = arith.constant 0 : i32
    %c0_i32_0 = arith.constant 0 : i32
    return %arg0, %c0_i32, %arg1 : i32, i32, i32
  }
}

</mosaic_0001>

<bundles_post_ra>
// kernel: cross_style_randomization.1
= control target key start
LH: loop header
LB: loop body
LE: loop exit
PB: predicated region body
PF: predicated region fallthrough
CT: control target
= control target key end

     0   :  { %14 = vsyncpa [#allocation3], 0  ;;  %s1300_s0 = inlined_call_operand.hbm [shape: f32[2,8,128], index: 0, kind: input, shape index: {}]   ;;  %s1301_s1 = inlined_call_operand.hbm [shape: f32[2,8,128], index: 1, kind: input, shape index: {}]   ;;  %s1302_s2 = inlined_call_operand.hbm [shape: f32[2,8,128], index: 2, kind: input, shape index: {}]   ;;  %s1303_s3 = inlined_call_operand.vmem [shape: f32[2,1,1], index: 3, kind: input, shape index: {}]   ;;  %s1304_s4 = inlined_call_operand.vmem [shape: f32[2,1,1], index: 4, kind: input, shape index: {}]   ;;  %s1305_s5 = inlined_call_operand.vmem [shape: f32[2,1,1], index: 5, kind: input, shape index: {}]   ;;  %s1306_s6 = inlined_call_operand.hbm [shape: f32[2,8,128], index: 6, kind: output, shape index: {0}]   ;;  %s1307_s7 = inlined_call_operand.hbm [shape: f32[2,8,128], index: 7, kind: output, shape index: {1}]   ;;  %s1308_s8 = inlined_call_operand.hbm [shape: f32[2,8,128], index: 8, kind: output, shape index: {2}]  }
   0x1   :  { %15 = vsyncpa [#allocation6], 0 }
   0x2   :  { %16 = vsyncpa [#allocation4], 0 }
   0x3   :  { %17 = vsyncpa [#allocation10], 0  ;;  %s35_s29 = sshll.u32 %s1301_s1, 4  ;;  %s784_s30 = smov [#allocation5]   ;;  %s36_s29 = int_to_ptr.hbm [resolvable:$true] %s35_s29 }
   0x4   :  { %s37_s9 = sshll.u32 %s784_s30, 4  ;;  %s22_s12 = sshll.u32 %s1300_s0, 4  ;;  %s38_s9 = int_to_ptr.vmem [resolvable:$true] %s37_s9  ;;  %s23_s12 = int_to_ptr.hbm [resolvable:$true] %s22_s12 }
   0x5   :  { %s785_s13 = smov 128   ;;  %s786_s14 = smov 8  }
   0x6   :  { %43 = dma.hbm_to_vmem [thread:$0]  %s36_s29, 256, %s38_s9, [#allocation6], %s785_s13, %s785_s13, %s786_s14  }
   0x7   :  { %s787_s15 = smov [#allocation2]   ;;  %s48_s1 = sshll.u32 %s1302_s2, 4  ;;  %s49_s1 = int_to_ptr.hbm [resolvable:$true] %s48_s1 }
   0x8   :  { %s24_s16 = sshll.u32 %s787_s15, 4  ;;  %s788_s0 = smov [#allocation7]   ;;  %s25_s16 = int_to_ptr.vmem [resolvable:$true] %s24_s16 }
   0x9   :  { %30 = dma.hbm_to_vmem [thread:$0]  %s23_s12, 256, %s25_s16, [#allocation3], %s785_s13, %s785_s13, %s786_s14  }
   0xa   :  { %s50_s19 = sshll.u32 %s788_s0, 4  ;;  %s51_s19 = int_to_ptr.vmem [resolvable:$true] %s50_s19 }
   0xb   :  { %56 = dma.hbm_to_vmem [thread:$0]  %s49_s1, 256, %s51_s19, [#allocation6], %s785_s13, %s785_s13, %s786_s14  }
   0xc   :  { %776 = dma.done.wait [#allocation3], 256  }
   0xd   :  { %777 = vsyncadd [#allocation3], 4294967040 }
   0xe   :  { %778 = dma.done.wait [#allocation6], 512  }
   0xf   :  { %779 = vsyncadd [#allocation6], 4294966784  ;;  %v789_v0 = vmov 0   ;;  %v186_v1 = vld [vmem:[%s1304_s4] sm:$0x1]  ;;  %v790_v19 = vmov 8.0  }
  0x10   :  { %605 = vset.pattern.permute.xlu2 %v789_v0  ;;  %604 = vset.pattern.permute.xlu1 %v789_v0  ;;  %v184_v2 = vld [vmem:[%s1303_s3] sm:$0x1]  ;;  %v254_v3 = vmul.f32 0.5, %v186_v1  ;;  %v238_v4 = vsub.f32 1.0, %v186_v1  ;;  %v187_v6 = vld [vmem:[%s1304_s4 + $0x1] sm:$0x1]  ;;  %606 = vrcp.f32 %v790_v19 }
  0x11   :  { %603 = vset.pattern.permute.xlu0 %v789_v0  ;;  %v190_v5 = vsub.f32 1.0, %v184_v2  ;;  %v185_v7 = vld [vmem:[%s1303_s3 + $0x1] sm:$0x1]  ;;  %v255_v8 = vmul.f32 0.5, %v187_v6  ;;  %v239_v9 = vsub.f32 1.0, %v187_v6  ;;  %v206_v12 = vmul.f32 0.5, %v184_v2 }
  0x12   :  { %258 = vperm.xlu1 %604, %v254_v3   ;;  %242 = vperm.xlu0 %603, %v238_v4   ;;  %v191_v10 = vsub.f32 1.0, %v185_v7  ;;  %v188_v11 = vld [vmem:[%s1305_s5] sm:$0x1]  ;;  %v207_v13 = vmul.f32 0.5, %v185_v7  ;;  %v189_v15 = vld [vmem:[%s1305_s5 + $0x1] sm:$0x1] }
  0x13   :  { %194 = vperm.xlu2 %605, %v190_v5   ;;  %v286_v14 = vsub.f32 1.0, %v188_v11  ;;  %v302_v16 = vmul.f32 0.5, %v188_v11  ;;  %v287_v17 = vsub.f32 1.0, %v189_v15  ;;  %v303_v18 = vmul.f32 0.5, %v189_v15  ;;  %v875_v23 = vld [vmem:[#allocation5] sm:$0xff]  ;;  %v879_v30 = vld [vmem:[#allocation5 + $0x8] sm:$0xff] }
  0x14   :  { %v120_v24 = vrot.slane %v875_v23, 4  ;;  %v126_v32 = vrot.slane %v879_v30, 4  ;;  %v882_v34 = vld [vmem:[#allocation2] sm:$0xff]  ;;  %v884_v35 = vld [vmem:[#allocation2 + $0x8] sm:$0xff]  ;;  %s791_s3 = smov [#allocation9]   ;;  %s557_s10 = sshll.u32 %s1307_s7, 4  ;;  %s558_s10 = int_to_ptr.hbm [resolvable:$true] %s557_s10 }
  0x15   :  { %v886_v36 = vld [vmem:[#allocation7] sm:$0xff]  ;;  %v81_v39 = vrot.slane %v882_v34, 4  ;;  %v87_v40 = vrot.slane %v884_v35, 4  ;;  %v892_v42 = vld [vmem:[#allocation7 + $0x8] sm:$0xff]  ;;  %s1236_s5 = sshll.u32 %s791_s3, 4  ;;  %s792_s7 = smov [#allocation8]   ;;  %s556_s5 = int_to_ptr.vmem [resolvable:$true] %s1236_s5 }
  0x16   :  { %v607_v20 = vpop.eup %606  ;;  %v121_v26 = vadd.f32 %v120_v24, %v875_v23  ;;  %v127_v38 = vadd.f32 %v126_v32, %v879_v30  ;;  %v152_v41 = vrot.slane %v886_v36, 4  ;;  %v158_v45 = vrot.slane %v892_v42, 4  ;;  %s1272_s11 = sshll.u32 %s792_s7, 4  ;;  %s544_s16 = sshll.u32 %s1306_s6, 4  ;;  %s543_s11 = int_to_ptr.vmem [resolvable:$true] %s1272_s11  ;;  %s545_s16 = int_to_ptr.hbm [resolvable:$true] %s544_s16 }
  0x17   :  { %v94_v21 = vmul.f32 8.0, %v607_v20  ;;  %vm98_vm0 = vweird.f32 %v607_v20  ;;  %v82_v46 = vadd.f32 %v81_v39, %v882_v34  ;;  %v88_v47 = vadd.f32 %v87_v40, %v884_v35  ;;  %s793_s6 = smov [#allocation11]   ;;  %s570_s0 = sshll.u32 %s1308_s8, 4  ;;  %s571_s0 = int_to_ptr.hbm [resolvable:$true] %s570_s0 }
  0x18   :  { %v122_v27 = vrot.slane %v121_v26, 2  ;;  %v128_v44 = vrot.slane %v127_v38, 2  ;;  %v153_v48 = vadd.f32 %v152_v41, %v886_v36  ;;  %v159_v51 = vadd.f32 %v158_v45, %v892_v42  ;;  %s568_s17 = sshll.u32 %s793_s6, 4  ;;  %s569_s17 = int_to_ptr.vmem [resolvable:$true] %s568_s17 }
  0x19   :  { %v95_v22 = vsub.f32 1.0, %v94_v21  ;;  %v83_v52 = vrot.slane %v82_v46, 2  ;;  %v89_v53 = vrot.slane %v88_v47, 2 }
  0x1a   :  { %264 = vperm.xlu1 %604, %v255_v8   ;;  %248 = vperm.xlu0 %603, %v239_v9   ;;  %v123_v29 = vadd.f32 %v122_v27, %v121_v26  ;;  %v129_v50 = vadd.f32 %v128_v44, %v127_v38  ;;  %v154_v54 = vrot.slane %v153_v48, 2  ;;  %v160_v62 = vrot.slane %v159_v51, 2 }
  0x1b   :  { %200 = vperm.xlu2 %605, %v191_v10   ;;  %v96_v25 = vmul.f32 %v607_v20, %v95_v22  ;;  %v84_v57 = vadd.f32 %v83_v52, %v82_v46  ;;  %v90_v58 = vadd.f32 %v89_v53, %v88_v47 }
  0x1c   :  { %v124_v31 = vrot.slane %v123_v29, 1  ;;  %v130_v56 = vrot.slane %v129_v50, 1  ;;  %v155_v59 = vadd.f32 %v154_v54, %v153_v48  ;;  %v161_v8 = vadd.f32 %v160_v62, %v159_v51 }
  0x1d   :  { %v97_v28 = vadd.f32 %v607_v20, %v96_v25  ;;  %v85_v63 = vrot.slane %v84_v57, 1  ;;  %v91_v0 = vrot.slane %v90_v58, 1 }
  0x1e   :  { %v125_v37 = vadd.f32 %v124_v31, %v123_v29  ;;  %v131_v61 = vadd.f32 %v130_v56, %v129_v50  ;;  %v156_v1 = vrot.slane %v155_v59, 1 }
  0x1f   :  { %v99_v33 = vsel %vm98_vm0, %v607_v20, %v97_v28  ;;  %v86_v4 = vadd.f32 %v85_v63, %v84_v57  ;;  %v92_v5 = vadd.f32 %v91_v0, %v90_v58 }
  0x20   :  { %v894_v43 = vmul.f32 %v125_v37, %v99_v33  ;;  %v903_v3 = vmul.f32 %v131_v61, %v99_v33  ;;  %v157_v11 = vadd.f32 %v156_v1, %v155_v59 }
  0x21   :  { %v907_v9 = vmul.f32 %v99_v33, %v86_v4  ;;  %v909_v10 = vmul.f32 %v99_v33, %v92_v5 }
  0x22   :  { %216 = vperm.xlu1 %604, %v207_v13   ;;  %210 = vperm.xlu0 %603, %v206_v12   ;;  %v134_v49 = vsub.f32 %v875_v23, %v894_v43  ;;  %v135_v7 = vsub.f32 %v879_v30, %v903_v3  ;;  %v915_v20 = vmul.f32 %v157_v11, %v99_v33 }
  0x23   :  { %290 = vperm.xlu2 %605, %v286_v14   ;;  %v102_v13 = vsub.f32 %v882_v34, %v907_v9  ;;  %v103_v14 = vsub.f32 %v884_v35, %v909_v10 }
  0x24   :  { %v136_v55 = vmul.f32 %v134_v49, %v134_v49  ;;  %v137_v12 = vmul.f32 %v135_v7, %v135_v7  ;;  %v166_v31 = vsub.f32 %v886_v36, %v915_v20 }
  0x25   :  { %v105_v19 = vmul.f32 %v103_v14, %v103_v14 }
  0x26   :  { %v138_v60 = vrot.slane %v136_v55, 4  ;;  %v168_v41 = vmul.f32 %v166_v31, %v166_v31 }
  0x27   :  { %v112_v24 = vrot.slane %v105_v19, 4 }
  0x28   :  { %v139_v2 = vadd.f32 %v138_v60, %v136_v55  ;;  %v170_v49 = vrot.slane %v168_v41, 4 }
  0x29   :  { %v113_v29 = vadd.f32 %v112_v24, %v105_v19 }
  0x2a   :  { %306 = vperm.xlu1 %604, %v302_v16   ;;  %296 = vperm.xlu0 %603, %v287_v17   ;;  %v140_v6 = vrot.slane %v139_v2, 2  ;;  %v144_v16 = vrot.slane %v137_v12, 4  ;;  %v162_v17 = vrot.slane %v161_v8, 1  ;;  %v171_v54 = vadd.f32 %v170_v49, %v168_v41 }
  0x2b   :  { %312 = vperm.xlu2 %605, %v303_v18   ;;  %v104_v18 = vmul.f32 %v102_v13, %v102_v13  ;;  %v114_v40 = vrot.slane %v113_v29, 2 }
  0x2c   :  { %v141_v15 = vadd.f32 %v140_v6, %v139_v2  ;;  %v145_v21 = vadd.f32 %v144_v16, %v137_v12  ;;  %v163_v26 = vadd.f32 %v162_v17, %v161_v8  ;;  %v172_v59 = vrot.slane %v171_v54, 2 }
  0x2d   :  { %v106_v22 = vrot.slane %v104_v18, 4  ;;  %v115_v48 = vadd.f32 %v114_v40, %v113_v29 }
  0x2e   :  { %v142_v25 = vrot.slane %v141_v15, 1  ;;  %v146_v28 = vrot.slane %v145_v21, 2  ;;  %v919_v37 = vmul.f32 %v163_v26, %v99_v33  ;;  %v173_v1 = vadd.f32 %v172_v59, %v171_v54 }
  0x2f   :  { %v107_v27 = vadd.f32 %v106_v22, %v104_v18  ;;  %v116_v33 = vrot.slane %v115_v48, 1 }
  0x30   :  { %v143_v32 = vadd.f32 %v142_v25, %v141_v15  ;;  %v147_v39 = vadd.f32 %v146_v28, %v145_v21  ;;  %v167_v45 = vsub.f32 %v892_v42, %v919_v37  ;;  %v174_v8 = vrot.slane %v173_v1, 1 }
  0x31   :  { %v108_v38 = vrot.slane %v107_v27, 2  ;;  %v117_v58 = vadd.f32 %v116_v33, %v115_v48 }
  0x32   :  { %v921_v44 = vmul.f32 0.14285715, %v143_v32  ;;  %v148_v47 = vrot.slane %v147_v39, 1  ;;  %v169_v51 = vmul.f32 %v167_v45, %v167_v45  ;;  %v175_v13 = vadd.f32 %v174_v8, %v173_v1 }
  0x33   :  { %v109_v46 = vadd.f32 %v108_v38, %v107_v27  ;;  %v933_v0 = vmul.f32 0.14285715, %v117_v58 }
  0x34   :  { %v404_v50 = vadd.f32 1e-05, %v921_v44  ;;  %v149_v53 = vadd.f32 %v148_v47, %v147_v39  ;;  %v176_v55 = vrot.slane %v169_v51, 4  ;;  %v952_v19 = vmul.f32 0.14285715, %v175_v13 }
  0x35   :  { %v110_v52 = vrot.slane %v109_v46, 1  ;;  %v939_v4 = vadd.f32 1e-05, %v933_v0 }
  0x36   :  { %608 = vrcp.f32 %v404_v50  ;;  %v926_v57 = vmul.f32 0.14285715, %v149_v53  ;;  %v177_v60 = vadd.f32 %v176_v55, %v169_v51  ;;  %vm411_vm1 = vweird.f32 %v404_v50 }
  0x37   :  { %v111_v56 = vadd.f32 %v110_v52, %v109_v46  ;;  %v959_v24 = vadd.f32 1e-05, %v952_v19  ;;  %v417_v25 = vand.u32 2147483648, %v404_v50  ;;  %v415_v31 = vand.u32 2147483647, %v404_v50 }
  0x38   :  { %v931_v62 = vadd.f32 1e-05, %v926_v57  ;;  %v178_v5 = vrot.slane %v177_v60, 2  ;;  %vm358_vm7 = vweird.f32 %v939_v4 }
  0x39   :  { %v928_v61 = vmul.f32 0.14285715, %v111_v56  ;;  %v418_v39 = vor.u32 1.1754944e-38, %v417_v25  ;;  %vm416_vm4 = vcmp.eq.f32.partialorder %v415_v31, 8.507059e+37 }
  0x3a   :  { %610 = vrcp.f32 %v931_v62  ;;  %v179_v11 = vadd.f32 %v178_v5, %v177_v60  ;;  %v432_v55 = vand.u32 2147483648, %v931_v62  ;;  %vm426_vm5 = vweird.f32 %v931_v62 }
  0x3b   :  { %v936_v2 = vadd.f32 1e-05, %v928_v61  ;;  %v430_v5 = vand.u32 2147483647, %v931_v62 }
  0x3c   :  { %v609_v63 = vpop.eup %608  ;;  %v180_v15 = vrot.slane %v179_v11, 1 }
  0x3d   :  { %v407_v6 = vmul.f32 %v609_v63, %v404_v50  ;;  %612 = vrcp.f32 %v936_v2  ;;  %vm412_vm2 = vweird.f32 %v609_v63  ;;  %vm343_vm9 = vweird.f32 %v936_v2 }
  0x3e   :  { %614 = vrcp.f32 %v939_v4  ;;  %v181_v26 = vadd.f32 %v180_v15, %v179_v11  ;;  %vm965_vm3 = vmor %vm411_vm1, %vm412_vm2  ;;  %v364_v11 = vand.u32 2147483648, %v939_v4  ;;  %vm1033_vm13 = vcmp.eq.f32.partialorder %v430_v5, 8.507059e+37 }
  0x3f   :  { %v408_v12 = vsub.f32 1.0, %v407_v6  ;;  %616 = vrcp.f32 %v959_v24  ;;  %vm479_vm1 = vweird.f32 %v959_v24 }
  0x40   :  { %v946_v14 = vpop.eup %610  ;;  %v970_v40 = vmul.f32 0.14285715, %v181_v26  ;;  %v362_v26 = vand.u32 2147483647, %v939_v4 }
  0x41   :  { %v409_v17 = vmul.f32 %v609_v63, %v408_v12  ;;  %v422_v21 = vmul.f32 %v946_v14, %v931_v62  ;;  %vm427_vm6 = vweird.f32 %v946_v14  ;;  %v349_v12 = vand.u32 2147483648, %v936_v2 }
  0x42   :  { %v981_v52 = vadd.f32 1e-05, %v970_v40  ;;  %vm1013_vm11 = vmor %vm426_vm5, %vm427_vm6  ;;  %v347_v62 = vand.u32 2147483647, %v936_v2  ;;  %vm363_vm15 = vcmp.eq.f32.partialorder %v362_v26, 8.507059e+37 }
  0x43   :  { %v948_v16 = vpop.eup %612  ;;  %v410_v29 = vadd.f32 %v609_v63, %v409_v17  ;;  %v423_v38 = vsub.f32 1.0, %v422_v21 }
  0x44   :  { %v950_v18 = vpop.eup %614  ;;  %v339_v27 = vmul.f32 %v948_v16, %v936_v2  ;;  %618 = vrcp.f32 %v981_v52  ;;  %vm344_vm10 = vweird.f32 %v948_v16  ;;  %vm348_vm0 = vcmp.eq.f32.partialorder %v347_v62, 8.507059e+37 }
  0x45   :  { %v354_v28 = vmul.f32 %v950_v18, %v939_v4  ;;  %v414_v48 = vsel %vm965_vm3, %v609_v63, %v410_v29  ;;  %v424_v51 = vmul.f32 %v946_v14, %v423_v38  ;;  %v993_v60 = vpop.eup %616  ;;  %vm359_vm8 = vweird.f32 %v950_v18  ;;  %vm1041_vm14 = vmor %vm343_vm9, %vm344_vm10 }
  0x46   :  { %v340_v41 = vsub.f32 1.0, %v339_v27  ;;  %v419_v54 = vsel %vm416_vm4, %v418_v39, %v414_v48  ;;  %vm1025_vm12 = vmor %vm358_vm7, %vm359_vm8  ;;  %v475_v32 = vmul.f32 %v993_v60, %v959_v24  ;;  %v483_v62 = vand.u32 2147483647, %v959_v24 }
  0x47   :  { %v355_v45 = vsub.f32 1.0, %v354_v28  ;;  %v425_v1 = vadd.f32 %v946_v14, %v424_v51  ;;  %vm480_vm2 = vweird.f32 %v993_v60  ;;  %vm494_vm5 = vweird.f32 %v981_v52 }
  0x48   :  { %v341_v59 = vmul.f32 %v948_v16, %v340_v41  ;;  %vm1112_vm3 = vcmp.eq.f32.partialorder %v483_v62, 8.507059e+37  ;;  %vm1124_vm4 = vmor %vm479_vm1, %vm480_vm2 }
  0x49   :  { %v356_v58 = vmul.f32 %v950_v18, %v355_v45  ;;  %v433_v45 = vor.u32 1.1754944e-38, %v432_v55  ;;  %v365_v55 = vor.u32 1.1754944e-38, %v364_v11 }
  0x4a   :  { %v342_v27 = vadd.f32 %v948_v16, %v341_v59  ;;  %v350_v59 = vor.u32 1.1754944e-38, %v349_v12 }
  0x4b   :  { %v357_v25 = vadd.f32 %v950_v18, %v356_v58 }
  0x4c   :  { %v346_v5 = vsel %vm1041_vm14, %v948_v16, %v342_v27 }
  0x4d   :  { %v361_v58 = vsel %vm1025_vm12, %v950_v18, %v357_v25  ;;  %v351_v21 = vsel %vm348_vm0, %v350_v59, %v346_v5 }
  0x6d   :  { %v942_v7 = vpop.permute.xlu2 %194 }
  0x6e   :  { %v197_v53 = vperm.slane %v942_v7, 0 }
  0x75   :  { %v956_v22 = vpop.permute.xlu2 %200 }
  0x76   :  { %v203_v38 = vperm.slane %v956_v22, 0 }
  0x78   :  { %v229_v18 = vmul.f32 %v203_v38, %v933_v0 }
  0x7d   :  { %v995_v63 = vpop.permute.xlu2 %290 }
  0x7e   :  { %v1309_v48 = vperm.slane %v995_v63, 0 }
  0x80   :  { %v1078_v11 = vmul.f32 %v1309_v48, %v952_v19 }
  0x84   :  { %v259_v46 = vpop.permute.xlu1 %258  ;;  %v972_v47 = vpop.permute.xlu0 %242 }
  0x85   :  { %v976_v49 = vperm.slane %v259_v46, 0  ;;  %v245_v50 = vperm.slane %v972_v47, 0  ;;  %v1045_v46 = vpop.eup %618 }
  0x86   :  { %vm495_vm6 = vweird.f32 %v1045_v46 }
  0x87   :  { %v276_v33 = vmul.f32 %v245_v50, %v921_v44  ;;  %v278_v56 = vmul.f32 %v976_v49, %v928_v61  ;;  %v282_v8 = vmul.f32 %v976_v49, %v952_v19  ;;  %vm1153_vm7 = vmor %vm494_vm5, %vm495_vm6 }
  0x89   :  { %v280_v6 = vadd.f32 %v278_v56, %v276_v33  ;;  %v429_v33 = vsel %vm1013_vm11, %v946_v14, %v425_v1  ;;  %v490_v14 = vmul.f32 %v1045_v46, %v981_v52  ;;  %v313_v1 = vpop.permute.xlu2 %312 }
  0x8a   :  { %v434_v12 = vsel %vm1033_vm13, %v433_v45, %v429_v33  ;;  %v1087_v31 = vperm.slane %v313_v1, 0  ;;  %v268_v33 = vmul.f32 %v976_v49, %v907_v9 }
  0x8b   :  { %v284_v13 = vadd.f32 %v282_v8, %v280_v6  ;;  %v476_v6 = vsub.f32 1.0, %v475_v32  ;;  %v485_v32 = vand.u32 2147483648, %v959_v24 }
  0x8c   :  { %v265_v15 = vpop.permute.xlu1 %264  ;;  %v1009_v17 = vpop.permute.xlu0 %248 }
  0x8d   :  { %v1020_v28 = vperm.slane %v265_v15, 0  ;;  %v251_v29 = vperm.slane %v1009_v17, 0  ;;  %v402_v39 = vadd.f32 1e-05, %v284_v13  ;;  %v366_v15 = vsel %vm363_vm15, %v365_v55, %v361_v58 }
  0x8e   :  { %v477_v27 = vmul.f32 %v993_v60, %v476_v6  ;;  %v1102_v55 = vmul.f32 %v976_v49, %v915_v20  ;;  %v205_v17 = vmul.f32 %v203_v38, %v909_v10 }
  0x8f   :  { %v277_v51 = vmul.f32 %v251_v29, %v926_v57  ;;  %v1054_v56 = vmul.f32 %v419_v54, %v402_v39  ;;  %v279_v2 = vmul.f32 %v1020_v28, %v933_v0  ;;  %v228_v54 = vmul.f32 %v197_v53, %v928_v61 }
  0x90   :  { %v283_v16 = vmul.f32 %v1020_v28, %v970_v40  ;;  %v491_v39 = vsub.f32 1.0, %v490_v14  ;;  %v478_v6 = vadd.f32 %v993_v60, %v477_v27  ;;  %v253_v14 = vmul.f32 %v251_v29, %v903_v3 }
  0x91   :  { %620 = vrsqrt.f32 %v1054_v56  ;;  %v281_v8 = vadd.f32 %v279_v2, %v277_v51  ;;  %v252_v51 = vmul.f32 %v245_v50, %v894_v43  ;;  %vm443_vm9 = vcmp.eq.f32.partialorder %v1054_v56, inf }
  0x92   :  { %v492_v49 = vmul.f32 %v1045_v46, %v491_v39  ;;  %vm445_vm10 = vcmp.eq.f32.partialorder %v1054_v56, 0.0 }
  0x93   :  { %v285_v25 = vadd.f32 %v283_v16, %v281_v8  ;;  %v270_v39 = vadd.f32 %v268_v33, %v252_v51  ;;  %v331_v51 = vmul.f32 %v1087_v31, %v926_v57 }
  0x94   :  { %v217_v13 = vpop.permute.xlu1 %216  ;;  %v211_v61 = vpop.permute.xlu0 %210  ;;  %v493_v48 = vadd.f32 %v1045_v46, %v492_v49 }
  0x95   :  { %v1082_v26 = vperm.slane %v217_v13, 0  ;;  %v1084_v0 = vperm.slane %v211_v61, 0  ;;  %v403_v41 = vadd.f32 1e-05, %v285_v25  ;;  %v498_v13 = vand.u32 2147483647, %v981_v52 }
  0x96   :  { %v500_v61 = vand.u32 2147483648, %v981_v52 }
  0x97   :  { %v231_v45 = vmul.f32 %v1082_v26, %v926_v57  ;;  %v621_v4 = vpop.eup %620  ;;  %v230_v2 = vmul.f32 %v1084_v0, %v921_v44  ;;  %v1107_v59 = vmul.f32 %v434_v12, %v403_v41  ;;  %v235_v47 = vmul.f32 %v1082_v26, %v970_v40 }
  0x98   :  { %v437_v58 = vmul.f32 %v621_v4, %v1054_v56  ;;  %v234_v8 = vmul.f32 %v1084_v0, %v952_v19  ;;  %vm1157_vm8 = vcmp.eq.f32.partialorder %v498_v13, 8.507059e+37  ;;  %v221_v7 = vmul.f32 %v1082_v26, %v903_v3 }
  0x99   :  { %v233_v5 = vadd.f32 %v231_v45, %v229_v18  ;;  %v232_v50 = vadd.f32 %v230_v2, %v228_v54  ;;  %622 = vrsqrt.f32 %v1107_v59  ;;  %v482_v45 = vsel %vm1124_vm4, %v993_v60, %v478_v6 }
  0x9a   :  { %v438_v1 = vmul.f32 %v621_v4, %v437_v58  ;;  %v486_v2 = vor.u32 1.1754944e-38, %v485_v32  ;;  %v1328_v60 = vperm.slane %v995_v63, 0  ;;  %vm455_vm11 = vcmp.eq.f32.partialorder %v1107_v59, inf }
  0x9b   :  { %v237_v54 = vadd.f32 %v235_v47, %v233_v5  ;;  %v236_v27 = vadd.f32 %v234_v8, %v232_v50  ;;  %v327_v47 = vmul.f32 %v1087_v31, %v970_v40  ;;  %v458_v63 = vand.u32 2147483648, %v1107_v59 }
  0x9c   :  { %v307_v16 = vpop.permute.xlu1 %306  ;;  %v1129_v12 = vpop.permute.xlu0 %296  ;;  %v439_v25 = vmul.f32 0.5, %v438_v1  ;;  %v1209_v32 = vmul.f32 %v1328_v60, %v915_v20  ;;  %vm457_vm12 = vcmp.eq.f32.partialorder %v1107_v59, 0.0 }
  0x9d   :  { %v1134_v62 = vperm.slane %v307_v16, 0  ;;  %v299_v24 = vperm.slane %v1129_v12, 0  ;;  %v335_v41 = vadd.f32 1e-05, %v237_v54  ;;  %v334_v5 = vadd.f32 1e-05, %v236_v27 }
  0x9e   :  { %v440_v58 = vsub.f32 1.5, %v439_v25 }
  0x9f   :  { %v1143_v1 = vmul.f32 %v366_v15, %v335_v41  ;;  %v326_v50 = vmul.f32 %v1134_v62, %v952_v19  ;;  %v623_v15 = vpop.eup %622  ;;  %v1161_v6 = vmul.f32 %v351_v21, %v334_v5  ;;  %v325_v57 = vmul.f32 %v299_v24, %v970_v40 }
  0xa0   :  { %v441_v33 = vmul.f32 %v621_v4, %v440_v58  ;;  %v501_v19 = vor.u32 1.1754944e-38, %v500_v61  ;;  %v449_v49 = vmul.f32 %v623_v15, %v1107_v59  ;;  %v330_v8 = vmul.f32 %v1134_v62, %v921_v44 }
  0xa1   :  { %v328_v52 = vadd.f32 %v326_v50, %v1078_v11  ;;  %624 = vrsqrt.f32 %v1143_v1  ;;  %v329_v54 = vadd.f32 %v327_v47, %v325_v57  ;;  %v497_v21 = vsel %vm1153_vm7, %v1045_v46, %v493_v48 }
  0xa2   :  { %v442_v18 = vmul.f32 %v441_v33, %v1054_v56  ;;  %626 = vrsqrt.f32 %v1161_v6  ;;  %v446_v40 = vand.u32 2147483648, %v1054_v56  ;;  %v450_v4 = vmul.f32 %v623_v15, %v449_v49 }
  0xa3   :  { %v332_v11 = vadd.f32 %v330_v8, %v328_v52  ;;  %v487_v44 = vsel %vm1112_vm3, %v486_v2, %v482_v45  ;;  %v333_v13 = vadd.f32 %v331_v51, %v329_v54  ;;  %v502_v46 = vsel %vm1157_vm8, %v501_v19, %v497_v21 }
  0xa4   :  { %v444_v16 = vsel %vm443_vm9, %v1054_v56, %v442_v18  ;;  %v451_v25 = vmul.f32 0.5, %v450_v4  ;;  %v204_v48 = vmul.f32 %v197_v53, %v907_v9  ;;  %v274_v41 = vadd.f32 %v1102_v55, %v270_v39 }
  0xa5   :  { %v447_v61 = vsel %vm445_vm10, %v446_v40, %v444_v16  ;;  %v470_v27 = vadd.f32 1e-05, %v332_v11  ;;  %v471_v5 = vadd.f32 1e-05, %v333_v13  ;;  %v269_v45 = vmul.f32 %v1020_v28, %v909_v10 }
  0xa6   :  { %v460_v58 = vmul.f32 %v447_v61, %v894_v43  ;;  %v452_v2 = vsub.f32 1.5, %v451_v25  ;;  %v464_v39 = vmul.f32 %v447_v61, %v875_v23  ;;  %v220_v33 = vmul.f32 %v1084_v0, %v894_v43 }
  0xa7   :  { %v625_v56 = vpop.eup %624  ;;  %v1194_v47 = vmul.f32 %v487_v44, %v470_v27  ;;  %v1198_v53 = vmul.f32 %v502_v46, %v471_v5  ;;  %v1215_v57 = vmul.f32 %v1087_v31, %v909_v10  ;;  %v271_v22 = vadd.f32 %v269_v45, %v253_v14 }
  0xa8   :  { %v627_v50 = vpop.eup %626  ;;  %v462_v51 = vsub.f32 %v274_v41, %v460_v58  ;;  %v381_v55 = vmul.f32 %v625_v56, %v1143_v1  ;;  %v453_v29 = vmul.f32 %v623_v15, %v452_v2  ;;  %v223_v19 = vadd.f32 %v221_v7, %v205_v17 }
  0xa9   :  { %628 = vrsqrt.f32 %v1194_v47  ;;  %v369_v23 = vmul.f32 %v627_v50, %v1161_v6  ;;  %v273_v52 = vmul.f32 %v1020_v28, %v919_v37  ;;  %v225_v21 = vmul.f32 %v1082_v26, %v919_v37 }
  0xaa   :  { %630 = vrsqrt.f32 %v1198_v53  ;;  %v454_v38 = vmul.f32 %v453_v29, %v1107_v59  ;;  %v466_v15 = vadd.f32 %v464_v39, %v462_v51  ;;  %v382_v49 = vmul.f32 %v625_v56, %v381_v55 }
  0xab   :  { %v370_v18 = vmul.f32 %v627_v50, %v369_v23  ;;  %v222_v40 = vadd.f32 %v220_v33, %v204_v48  ;;  %v275_v16 = vadd.f32 %v273_v52, %v271_v22  ;;  %v1231_v13 = vmul.f32 %v1087_v31, %v903_v3 }
  0xac   :  { %v456_v8 = vsel %vm455_vm11, %v1107_v59, %v454_v38  ;;  %468 = vst [vmem:[#allocation9] sm:$0xff] %v466_v15  ;;  %v383_v4 = vmul.f32 0.5, %v382_v49  ;;  %v227_v25 = vadd.f32 %v225_v21, %v223_v19  ;;  %v224_v59 = vmul.f32 %v1084_v0, %v915_v20 }
  0xad   :  { %v459_v54 = vsel %vm457_vm12, %v458_v63, %v456_v8  ;;  %v371_v28 = vmul.f32 0.5, %v370_v18  ;;  %v316_v0 = vmul.f32 %v1134_v62, %v907_v9  ;;  %v320_v14 = vmul.f32 %v1134_v62, %v894_v43 }
  0xae   :  { %v461_v44 = vmul.f32 %v459_v54, %v903_v3  ;;  %v384_v26 = vsub.f32 1.5, %v383_v4  ;;  %v465_v31 = vmul.f32 %v459_v54, %v879_v30  ;;  %v226_v41 = vadd.f32 %v224_v59, %v222_v40 }
  0xaf   :  { %v629_v11 = vpop.eup %628  ;;  %v372_v48 = vsub.f32 1.5, %v371_v28  ;;  %v301_v30 = vmul.f32 %v299_v24, %v919_v37  ;;  %vm375_vm13 = vcmp.eq.f32.partialorder %v1161_v6, inf  ;;  %vm387_vm14 = vcmp.eq.f32.partialorder %v1143_v1, inf }
  0xb0   :  { %v631_v61 = vpop.eup %630  ;;  %v505_v27 = vmul.f32 %v629_v11, %v1194_v47  ;;  %v463_v46 = vsub.f32 %v275_v16, %v461_v44  ;;  %v385_v5 = vmul.f32 %v625_v56, %v384_v26  ;;  %v390_v43 = vand.u32 2147483648, %v1143_v1 }
  0xb1   :  { %v517_v3 = vmul.f32 %v631_v61, %v1198_v53  ;;  %v373_v51 = vmul.f32 %v627_v50, %v372_v48  ;;  %v378_v12 = vand.u32 2147483648, %v1161_v6  ;;  %vm389_vm15 = vcmp.eq.f32.partialorder %v1143_v1, 0.0 }
  0xb2   :  { %v506_v58 = vmul.f32 %v629_v11, %v505_v27  ;;  %v467_v2 = vadd.f32 %v465_v31, %v463_v46  ;;  %v386_v55 = vmul.f32 %v385_v5, %v1143_v1  ;;  %vm377_vm0 = vcmp.eq.f32.partialorder %v1161_v6, 0.0 }
  0xb3   :  { %v518_v45 = vmul.f32 %v631_v61, %v517_v3  ;;  %v374_v56 = vmul.f32 %v373_v51, %v1161_v6  ;;  %v318_v60 = vadd.f32 %v316_v0, %v1209_v32  ;;  %vm511_vm1 = vcmp.eq.f32.partialorder %v1194_v47, inf }
  0xb4   :  { %v507_v7 = vmul.f32 0.5, %v506_v58  ;;  %469 = vst [vmem:[#allocation9 + $0x8] sm:$0xff] %v467_v2  ;;  %v388_v24 = vsel %vm387_vm14, %v1143_v1, %v386_v55  ;;  %v319_v15 = vadd.f32 %v1215_v57, %v301_v30  ;;  %vm513_vm2 = vcmp.eq.f32.partialorder %v1194_v47, 0.0 }
  0xb5   :  { %v519_v17 = vmul.f32 0.5, %v518_v45  ;;  %563 = dma.vmem_to_hbm [thread:$0]  %s556_s5, 256, %s558_s10, [#allocation10], %s785_s13, %s785_s13, %s786_s14   ;;  %v376_v29 = vsel %vm375_vm13, %v1161_v6, %v374_v56  ;;  %v391_v39 = vsel %vm389_vm15, %v390_v43, %v388_v24  ;;  %vm523_vm3 = vcmp.eq.f32.partialorder %v1198_v53, inf }
  0xb6   :  { %v508_v62 = vsub.f32 1.5, %v507_v7  ;;  %v379_v22 = vsel %vm377_vm0, %v378_v12, %v376_v29  ;;  %v393_v38 = vmul.f32 %v391_v39, %v909_v10  ;;  %v397_v6 = vmul.f32 %v391_v39, %v884_v35 }
  0xb7   :  { %v520_v50 = vsub.f32 1.5, %v519_v17  ;;  %v392_v63 = vmul.f32 %v379_v22, %v907_v9  ;;  %v514_v10 = vand.u32 2147483648, %v1194_v47  ;;  %v396_v57 = vmul.f32 %v379_v22, %v882_v34 }
  0xb8   :  { %v509_v33 = vmul.f32 %v629_v11, %v508_v62  ;;  %v395_v19 = vsub.f32 %v227_v25, %v393_v38  ;;  %v526_v35 = vand.u32 2147483648, %v1198_v53  ;;  %vm525_vm4 = vcmp.eq.f32.partialorder %v1198_v53, 0.0 }
  0xb9   :  { %v521_v23 = vmul.f32 %v631_v61, %v520_v50  ;;  %v394_v9 = vsub.f32 %v226_v41, %v392_v63  ;;  %v322_v21 = vadd.f32 %v320_v14, %v318_v60  ;;  %v323_v34 = vadd.f32 %v1231_v13, %v319_v15 }
  0xba   :  { %v510_v1 = vmul.f32 %v509_v33, %v1194_v47  ;;  %v399_v52 = vadd.f32 %v397_v6, %v395_v19 }
  0xbb   :  { %v522_v32 = vmul.f32 %v521_v23, %v1198_v53  ;;  %v398_v54 = vadd.f32 %v396_v57, %v394_v9 }
  0xbc   :  { %v512_v49 = vsel %vm511_vm1, %v1194_v47, %v510_v1  ;;  %401 = vst [vmem:[#allocation8 + $0x8] sm:$0xff] %v399_v52 }
  0xbd   :  { %v515_v8 = vsel %vm513_vm2, %v514_v10, %v512_v49  ;;  %v524_v18 = vsel %vm523_vm3, %v1198_v53, %v522_v32  ;;  %400 = vst [vmem:[#allocation8] sm:$0xff] %v398_v54 }
  0xbe   :  { %v528_v40 = vmul.f32 %v515_v8, %v915_v20  ;;  %v527_v4 = vsel %vm525_vm4, %v526_v35, %v524_v18  ;;  %550 = dma.vmem_to_hbm [thread:$0]  %s543_s11, 256, %s545_s16, [#allocation4], %s785_s13, %s785_s13, %s786_s14   ;;  %v532_v20 = vmul.f32 %v515_v8, %v886_v36 }
  0xbf   :  { %v529_v47 = vmul.f32 %v527_v4, %v919_v37  ;;  %v533_v16 = vmul.f32 %v527_v4, %v892_v42 }
  0xc0   :  { %v530_v53 = vsub.f32 %v322_v21, %v528_v40 }
  0xc1   :  { %v531_v11 = vsub.f32 %v323_v34, %v529_v47 }
  0xc2   :  { %v534_v44 = vadd.f32 %v532_v20, %v530_v53 }
  0xc3   :  { %v535_v13 = vadd.f32 %v533_v16, %v531_v11 }
  0xc4   :  { %536 = vst [vmem:[#allocation11] sm:$0xff] %v534_v44 }
  0xc5   :  { %537 = vst [vmem:[#allocation11 + $0x8] sm:$0xff] %v535_v13 }
  0xc6   :  { %576 = dma.vmem_to_hbm [thread:$0]  %s569_s17, 256, %s571_s0, [#allocation10], %s785_s13, %s785_s13, %s786_s14  }
  0xc7   :  { %780 = dma.done.wait [#allocation4], 256  }
  0xc8   :  { %781 = vsyncadd [#allocation4], 4294967040 }
  0xc9   :  { %782 = dma.done.wait [#allocation10], 512  }
  0xca   :  { %783 = vsyncadd [#allocation10], 4294966784 }
  0xcb   :  { %589 = vsyncpa [#allocation3], 1 }
  0xcc   :  { %590 = vsyncpa [#allocation6], 1 }
  0xcd   :  { %591 = vsyncpa [#allocation4], 1 }
  0xce   :  { %592 = vsyncpa [#allocation10], 1 }

</bundles_post_ra>
